<compile_context>
chip_gen: v7x
topology: tpu7x:2x2x1
jax: 0.10.0
libtpu: 0.0.40
codegen_flags: <defaults>
</compile_context>

<pallas_src>
import jax
import jax.numpy as jnp
from jax import lax
from jax.experimental import pallas as pl
from jax.experimental.pallas import tpu as pltpu

EPS = 1e-5
NEG_SLOPE = 0.2


def _leaky(x):
    return jnp.where(x >= 0, x, NEG_SLOPE * x)


def dis_cnn_kernel(x_ref, w1_ref, w2_ref, w3_ref, p_ref, out_ref):
    # x_ref : (N, C_pad, L)  native layout (channel axis pre-padded to 8k)
    # w*_ref: (3, C_out, K)  tap-indexed conv weights
    # p_ref : (C_out, 7)     packed per-channel params [b1 b2 b3 g2 be2 g3 be3]
    # out   : (N, C_out, L)  native layout
    N, C_pad, L = x_ref.shape
    NL = N * L                               # real packed lanes
    NLp = ((NL + 127) // 128) * 128          # lane-dense packed width
    inv_cnt = 1.0 / NL

    # In-kernel boundary / validity masks (no HBM mask streams).
    lane = lax.broadcasted_iota(jnp.int32, (1, NLp), 1)
    pos = lane % L
    valid = (lane < NL).astype(jnp.float32)         # 0 on the lane padding
    mask_m = (pos != 0).astype(jnp.float32)         # kills x[l-1] at pos == 0
    mask_p = (pos != (L - 1)).astype(jnp.float32)   # kills x[l+1] at pos == L-1

    p = p_ref[...]
    b1, b2, b3 = p[:, 0:1], p[:, 1:2], p[:, 2:3]
    g2, be2, g3, be3 = p[:, 3:4], p[:, 4:5], p[:, 5:6], p[:, 6:7]

    # Pack the batch into the lane axis inside VMEM (no wrapper transpose):
    # (N, C_pad, L) -> (C_pad, N*L), zero-padded to NLp lanes.
    xs = [x_ref[n] for n in range(N)]
    if NLp > NL:
        xs.append(jnp.zeros((C_pad, NLp - NL), jnp.float32))
    xp = jnp.concatenate(xs, axis=1)

    def conv(x, w_ref, b):
        # +/-1 lane shifts via XLU rotate; cross-sample / wrap-around bleed is
        # removed by the pos masks, lane padding is re-zeroed by `valid`.
        x_m1 = pltpu.roll(x, shift=1, axis=1) * mask_m         # x[:, l-1]
        x_p1 = pltpu.roll(x, shift=NLp - 1, axis=1) * mask_p   # x[:, l+1]
        acc = jnp.dot(w_ref[1], x, preferred_element_type=jnp.float32)
        acc = acc + jnp.dot(w_ref[0], x_m1, preferred_element_type=jnp.float32)
        acc = acc + jnp.dot(w_ref[2], x_p1, preferred_element_type=jnp.float32)
        return (acc + b) * valid

    def batchnorm(a, g, be):
        # Training-mode batch stats over (N, L) == packed lanes; padded lanes
        # are zero so the sums are exact.  Clamp var (E[x^2]-mean^2 >= 0).
        mean = jnp.sum(a, axis=1, keepdims=True) * inv_cnt
        msq = jnp.sum(a * a, axis=1, keepdims=True) * inv_cnt
        var = jnp.maximum(msq - mean * mean, 0.0)
        return (a - mean) * lax.rsqrt(var + EPS) * g + be

    h = _leaky(conv(xp, w1_ref, b1))
    h = batchnorm(_leaky(conv(h, w2_ref, b2)), g2, be2)
    h = batchnorm(_leaky(conv(h, w3_ref, b3)), g3, be3)

    # Unpack (C_out, NLp) -> native (N, C_out, L).
    for n in range(N):
        out_ref[n] = h[:, n * L:(n + 1) * L]


def dis_cnn_forward(x, params):
    N, C_in, L = x.shape
    C_out = params["w1"].shape[1]
    C_pad = ((C_in + 7) // 8) * 8
    NL = N * L
    NLp = ((NL + 127) // 128) * 128

    # Only the tiny layer-1 channel padding happens outside the kernel; the
    # activations go in/out of the kernel in their native (N, C, L) layout.
    xk = x if C_pad == C_in else jnp.pad(x, ((0, 0), (0, C_pad - C_in), (0, 0)))
    w1 = jnp.pad(params["w1"], ((0, 0), (0, 0), (0, C_pad - C_in)))
    w2, w3 = params["w2"], params["w3"]
    # Pack the 7 per-channel vectors into one (C_out, 7) array (one DMA).
    pvec = jnp.concatenate([params["b1"], params["b2"], params["b3"],
                            params["g2"], params["be2"],
                            params["g3"], params["be3"]], axis=1)

    f32 = 4
    est = f32 * (2 * (N * C_pad * L + N * C_out * L)            # double-buffered I/O
                 + 12 * max(C_pad, C_out) * NLp                  # live packed intermediates
                 + 2 * (3 * C_out * (C_pad + 2 * C_out) + 8 * C_out))
    vmem_limit = int(min(64 << 20, max(2 * est + (1 << 20), 4 << 20)))

    vmem = pl.BlockSpec(memory_space=pltpu.MemorySpace.VMEM)
    out = pl.pallas_call(
        dis_cnn_kernel,
        out_shape=jax.ShapeDtypeStruct((N, C_out, L), jnp.float32),
        in_specs=[vmem] * 5,
        out_specs=vmem,
        compiler_params=pltpu.CompilerParams(vmem_limit_bytes=vmem_limit),
    )(xk, w1, w2, w3, pvec)
    return out


# ---------------- pure-JAX reference (for correctness check) ----------------
def ref_forward(x, params):
    def conv(h, w_kio, b):
        w = jnp.transpose(w_kio, (1, 2, 0))   # (C_out, C_in, 3) for 'OIH'
        y = lax.conv_general_dilated(h, w, window_strides=(1,), padding=[(1, 1)],
                                     dimension_numbers=("NCH", "OIH", "NCH"))
        return y + b[None, :, :]

    def leaky(h):
        return jnp.where(h >= 0, h, NEG_SLOPE * h)

    def bn(h, g, be):
        m = jnp.mean(h, axis=(0, 2), keepdims=True)
        v = jnp.mean((h - m) ** 2, axis=(0, 2), keepdims=True)
        return (h - m) * lax.rsqrt(v + EPS) * g[None, :, :] + be[None, :, :]

    h = leaky(conv(x, params["w1"], params["b1"]))
    h = bn(leaky(conv(h, params["w2"], params["b2"])), params["g2"], params["be2"])
    h = bn(leaky(conv(h, params["w3"], params["b3"])), params["g3"], params["be3"])
    return h


if __name__ == "__main__":
    key = jax.random.PRNGKey(0)
    N, C_in, C_out, L = 2, 4, 8, 16
    ks = jax.random.split(key, 7)
    x = jax.random.normal(ks[0], (N, C_in, L), jnp.float32)
    params = {
        "w1": 0.3 * jax.random.normal(ks[1], (3, C_out, C_in), jnp.float32),
        "b1": 0.1 * jax.random.normal(ks[2], (C_out, 1), jnp.float32),
        "w2": 0.3 * jax.random.normal(ks[3], (3, C_out, C_out), jnp.float32),
        "b2": 0.1 * jax.random.normal(ks[4], (C_out, 1), jnp.float32),
        "w3": 0.3 * jax.random.normal(ks[5], (3, C_out, C_out), jnp.float32),
        "b3": 0.1 * jax.random.normal(ks[6], (C_out, 1), jnp.float32),
        # BatchNorm1d default affine init (weight=1, bias=0)
        "g2": jnp.ones((C_out, 1), jnp.float32),
        "be2": jnp.zeros((C_out, 1), jnp.float32),
        "g3": jnp.ones((C_out, 1), jnp.float32),
        "be3": jnp.zeros((C_out, 1), jnp.float32),
    }

    out = jax.block_until_ready(dis_cnn_forward(x, params))
    ref = jax.block_until_ready(ref_forward(x, params))
    assert out.shape == (N, C_out, L)
    err = float(jnp.max(jnp.abs(out - ref)))
    assert jnp.allclose(out, ref, atol=5e-4, rtol=5e-4), f"max abs err {err}"
    print("KERNEL_OK")
</pallas_src>

<mosaic_0001>
module attributes {stable_mosaic.version = 11 : i64} {
  func.func @dis_cnn_kernel(%arg0: memref<2x8x16xf32, #tpu.memory_space<vmem>>, %arg1: memref<3x8x8xf32, #tpu.memory_space<vmem>>, %arg2: memref<3x8x8xf32, #tpu.memory_space<vmem>>, %arg3: memref<3x8x8xf32, #tpu.memory_space<vmem>>, %arg4: memref<8x7xf32, #tpu.memory_space<vmem>>, %arg5: memref<2x8x16xf32, #tpu.memory_space<vmem>>) attributes {dimension_semantics = [], scalar_prefetch = 0 : i64, scratch_operands = 0 : i64, tpu.core_type = #tpu.core_type<tc>} {
    %0 = tpu.iota {dimensions = array<i32: 1>} : vector<1x128xi32>
    %c16_i32 = arith.constant 16 : i32
    %c0_i32 = arith.constant 0 : i32
    %1 = arith.cmpi eq, %c16_i32, %c0_i32 : i32
    %c1_i32 = arith.constant 1 : i32
    %2 = arith.select %1, %c1_i32, %c16_i32 : i32
    %3 = vector.broadcast %2 : i32 to vector<1x128xi32>
    %4 = arith.remsi %0, %3 : vector<1x128xi32>
    %c0_i32_0 = arith.constant 0 : i32
    %5 = vector.broadcast %c0_i32_0 : i32 to vector<1x128xi32>
    %6 = arith.cmpi ne, %4, %5 : vector<1x128xi32>
    %c0_i32_1 = arith.constant 0 : i32
    %7 = vector.broadcast %c0_i32_1 : i32 to vector<1x128xi32>
    %8 = arith.cmpi slt, %4, %7 : vector<1x128xi32>
    %c0_i32_2 = arith.constant 0 : i32
    %9 = arith.cmpi slt, %2, %c0_i32_2 : i32
    %10 = vector.broadcast %9 : i1 to vector<1x128xi1>
    %11 = vector.broadcast %10 : vector<1x128xi1> to vector<1x128xi1>
    %12 = arith.xori %8, %11 : vector<1x128xi1>
    %13 = arith.andi %12, %6 : vector<1x128xi1>
    %14 = vector.broadcast %2 : i32 to vector<1x128xi32>
    %15 = arith.addi %4, %14 : vector<1x128xi32>
    %16 = arith.select %13, %15, %4 : vector<1x128xi1>, vector<1x128xi32>
    %c32_i32 = arith.constant 32 : i32
    %17 = vector.broadcast %c32_i32 : i32 to vector<1x128xi32>
    %18 = arith.cmpi slt, %0, %17 : vector<1x128xi32>
    %19 = arith.extui %18 : vector<1x128xi1> to vector<1x128xi32>
    %20 = arith.sitofp %19 : vector<1x128xi32> to vector<1x128xf32>
    %c0_i32_3 = arith.constant 0 : i32
    %21 = vector.broadcast %c0_i32_3 : i32 to vector<1x128xi32>
    %22 = arith.cmpi ne, %16, %21 : vector<1x128xi32>
    %23 = arith.extui %22 : vector<1x128xi1> to vector<1x128xi32>
    %24 = arith.sitofp %23 : vector<1x128xi32> to vector<1x128xf32>
    %c15_i32 = arith.constant 15 : i32
    %25 = vector.broadcast %c15_i32 : i32 to vector<1x128xi32>
    %26 = arith.cmpi ne, %16, %25 : vector<1x128xi32>
    %27 = arith.extui %26 : vector<1x128xi1> to vector<1x128xi32>
    %28 = arith.sitofp %27 : vector<1x128xi32> to vector<1x128xf32>
    %c0 = arith.constant 0 : index
    %c0_4 = arith.constant 0 : index
    %29 = vector.load %arg4[%c0, %c0_4] : memref<8x7xf32, #tpu.memory_space<vmem>>, vector<8x7xf32>
    %30 = vector.extract_strided_slice %29 {offsets = [0, 0], sizes = [8, 1], strides = [1, 1]} : vector<8x7xf32> to vector<8x1xf32>
    %31 = vector.extract_strided_slice %29 {offsets = [0, 1], sizes = [8, 1], strides = [1, 1]} : vector<8x7xf32> to vector<8x1xf32>
    %32 = vector.extract_strided_slice %29 {offsets = [0, 2], sizes = [8, 1], strides = [1, 1]} : vector<8x7xf32> to vector<8x1xf32>
    %33 = vector.extract_strided_slice %29 {offsets = [0, 3], sizes = [8, 1], strides = [1, 1]} : vector<8x7xf32> to vector<8x1xf32>
    %34 = vector.extract_strided_slice %29 {offsets = [0, 4], sizes = [8, 1], strides = [1, 1]} : vector<8x7xf32> to vector<8x1xf32>
    %35 = vector.extract_strided_slice %29 {offsets = [0, 5], sizes = [8, 1], strides = [1, 1]} : vector<8x7xf32> to vector<8x1xf32>
    %36 = vector.extract_strided_slice %29 {offsets = [0, 6], sizes = [8, 1], strides = [1, 1]} : vector<8x7xf32> to vector<8x1xf32>
    %c0_5 = arith.constant 0 : index
    %c0_6 = arith.constant 0 : index
    %c0_7 = arith.constant 0 : index
    %37 = vector.load %arg0[%c0_5, %c0_6, %c0_7] : memref<2x8x16xf32, #tpu.memory_space<vmem>>, vector<1x8x16xf32>
    %38 = vector.shape_cast %37 : vector<1x8x16xf32> to vector<8x16xf32>
    %c1 = arith.constant 1 : index
    %c0_8 = arith.constant 0 : index
    %c0_9 = arith.constant 0 : index
    %39 = vector.load %arg0[%c1, %c0_8, %c0_9] : memref<2x8x16xf32, #tpu.memory_space<vmem>>, vector<1x8x16xf32>
    %40 = vector.shape_cast %39 : vector<1x8x16xf32> to vector<8x16xf32>
    %cst = arith.constant 0.000000e+00 : f32
    %41 = vector.broadcast %cst : f32 to vector<8x96xf32>
    %42 = tpu.concatenate %38, %40, %41 in 1 : vector<8x16xf32>, vector<8x16xf32>, vector<8x96xf32> -> vector<8x128xf32>
    %c1_i32_10 = arith.constant 1 : i32
    %43 = tpu.dynamic_rotate %42 by %c1_i32_10 dim 1 : vector<8x128xf32>, i32 -> vector<8x128xf32>
    %44 = vector.broadcast %24 : vector<1x128xf32> to vector<8x128xf32>
    %45 = arith.mulf %43, %44 : vector<8x128xf32>
    %c127_i32 = arith.constant 127 : i32
    %46 = tpu.dynamic_rotate %42 by %c127_i32 dim 1 : vector<8x128xf32>, i32 -> vector<8x128xf32>
    %47 = vector.broadcast %28 : vector<1x128xf32> to vector<8x128xf32>
    %48 = arith.mulf %46, %47 : vector<8x128xf32>
    %c1_11 = arith.constant 1 : index
    %c0_12 = arith.constant 0 : index
    %c0_13 = arith.constant 0 : index
    %49 = vector.load %arg1[%c1_11, %c0_12, %c0_13] : memref<3x8x8xf32, #tpu.memory_space<vmem>>, vector<1x8x8xf32>
    %50 = vector.shape_cast %49 : vector<1x8x8xf32> to vector<8x8xf32>
    %cst_14 = arith.constant dense<0.000000e+00> : vector<8x128xf32>
    %51 = tpu.matmul %50, %42, %cst_14 {dimension_numbers = #tpu.dot_dimension_numbers<[1], [0], [0], [1], [0, 0, 1, 1], [], []>} : vector<8x8xf32>, vector<8x128xf32>, vector<8x128xf32> -> vector<8x128xf32>
    %c0_15 = arith.constant 0 : index
    %c0_16 = arith.constant 0 : index
    %c0_17 = arith.constant 0 : index
    %52 = vector.load %arg1[%c0_15, %c0_16, %c0_17] : memref<3x8x8xf32, #tpu.memory_space<vmem>>, vector<1x8x8xf32>
    %53 = vector.shape_cast %52 : vector<1x8x8xf32> to vector<8x8xf32>
    %cst_18 = arith.constant dense<0.000000e+00> : vector<8x128xf32>
    %54 = tpu.matmul %53, %45, %cst_18 {dimension_numbers = #tpu.dot_dimension_numbers<[1], [0], [0], [1], [0, 0, 1, 1], [], []>} : vector<8x8xf32>, vector<8x128xf32>, vector<8x128xf32> -> vector<8x128xf32>
    %55 = arith.addf %51, %54 : vector<8x128xf32>
    %c2 = arith.constant 2 : index
    %c0_19 = arith.constant 0 : index
    %c0_20 = arith.constant 0 : index
    %56 = vector.load %arg1[%c2, %c0_19, %c0_20] : memref<3x8x8xf32, #tpu.memory_space<vmem>>, vector<1x8x8xf32>
    %57 = vector.shape_cast %56 : vector<1x8x8xf32> to vector<8x8xf32>
    %cst_21 = arith.constant dense<0.000000e+00> : vector<8x128xf32>
    %58 = tpu.matmul %57, %48, %cst_21 {dimension_numbers = #tpu.dot_dimension_numbers<[1], [0], [0], [1], [0, 0, 1, 1], [], []>} : vector<8x8xf32>, vector<8x128xf32>, vector<8x128xf32> -> vector<8x128xf32>
    %59 = arith.addf %55, %58 : vector<8x128xf32>
    %60 = vector.broadcast %30 : vector<8x1xf32> to vector<8x128xf32>
    %61 = arith.addf %59, %60 : vector<8x128xf32>
    %62 = vector.broadcast %20 : vector<1x128xf32> to vector<8x128xf32>
    %63 = arith.mulf %61, %62 : vector<8x128xf32>
    %cst_22 = arith.constant 0.000000e+00 : f32
    %64 = vector.broadcast %cst_22 : f32 to vector<8x128xf32>
    %65 = arith.cmpf oge, %63, %64 : vector<8x128xf32>
    %cst_23 = arith.constant 2.000000e-01 : f32
    %66 = vector.broadcast %cst_23 : f32 to vector<8x128xf32>
    %67 = arith.mulf %66, %63 : vector<8x128xf32>
    %68 = arith.select %65, %63, %67 : vector<8x128xi1>, vector<8x128xf32>
    %c1_i32_24 = arith.constant 1 : i32
    %69 = tpu.dynamic_rotate %68 by %c1_i32_24 dim 1 : vector<8x128xf32>, i32 -> vector<8x128xf32>
    %70 = vector.broadcast %24 : vector<1x128xf32> to vector<8x128xf32>
    %71 = arith.mulf %69, %70 : vector<8x128xf32>
    %c127_i32_25 = arith.constant 127 : i32
    %72 = tpu.dynamic_rotate %68 by %c127_i32_25 dim 1 : vector<8x128xf32>, i32 -> vector<8x128xf32>
    %73 = vector.broadcast %28 : vector<1x128xf32> to vector<8x128xf32>
    %74 = arith.mulf %72, %73 : vector<8x128xf32>
    %c1_26 = arith.constant 1 : index
    %c0_27 = arith.constant 0 : index
    %c0_28 = arith.constant 0 : index
    %75 = vector.load %arg2[%c1_26, %c0_27, %c0_28] : memref<3x8x8xf32, #tpu.memory_space<vmem>>, vector<1x8x8xf32>
    %76 = vector.shape_cast %75 : vector<1x8x8xf32> to vector<8x8xf32>
    %cst_29 = arith.constant dense<0.000000e+00> : vector<8x128xf32>
    %77 = tpu.matmul %76, %68, %cst_29 {dimension_numbers = #tpu.dot_dimension_numbers<[1], [0], [0], [1], [0, 0, 1, 1], [], []>} : vector<8x8xf32>, vector<8x128xf32>, vector<8x128xf32> -> vector<8x128xf32>
    %c0_30 = arith.constant 0 : index
    %c0_31 = arith.constant 0 : index
    %c0_32 = arith.constant 0 : index
    %78 = vector.load %arg2[%c0_30, %c0_31, %c0_32] : memref<3x8x8xf32, #tpu.memory_space<vmem>>, vector<1x8x8xf32>
    %79 = vector.shape_cast %78 : vector<1x8x8xf32> to vector<8x8xf32>
    %cst_33 = arith.constant dense<0.000000e+00> : vector<8x128xf32>
    %80 = tpu.matmul %79, %71, %cst_33 {dimension_numbers = #tpu.dot_dimension_numbers<[1], [0], [0], [1], [0, 0, 1, 1], [], []>} : vector<8x8xf32>, vector<8x128xf32>, vector<8x128xf32> -> vector<8x128xf32>
    %81 = arith.addf %77, %80 : vector<8x128xf32>
    %c2_34 = arith.constant 2 : index
    %c0_35 = arith.constant 0 : index
    %c0_36 = arith.constant 0 : index
    %82 = vector.load %arg2[%c2_34, %c0_35, %c0_36] : memref<3x8x8xf32, #tpu.memory_space<vmem>>, vector<1x8x8xf32>
    %83 = vector.shape_cast %82 : vector<1x8x8xf32> to vector<8x8xf32>
    %cst_37 = arith.constant dense<0.000000e+00> : vector<8x128xf32>
    %84 = tpu.matmul %83, %74, %cst_37 {dimension_numbers = #tpu.dot_dimension_numbers<[1], [0], [0], [1], [0, 0, 1, 1], [], []>} : vector<8x8xf32>, vector<8x128xf32>, vector<8x128xf32> -> vector<8x128xf32>
    %85 = arith.addf %81, %84 : vector<8x128xf32>
    %86 = vector.broadcast %31 : vector<8x1xf32> to vector<8x128xf32>
    %87 = arith.addf %85, %86 : vector<8x128xf32>
    %88 = vector.broadcast %20 : vector<1x128xf32> to vector<8x128xf32>
    %89 = arith.mulf %87, %88 : vector<8x128xf32>
    %cst_38 = arith.constant 0.000000e+00 : f32
    %90 = vector.broadcast %cst_38 : f32 to vector<8x128xf32>
    %91 = arith.cmpf oge, %89, %90 : vector<8x128xf32>
    %cst_39 = arith.constant 2.000000e-01 : f32
    %92 = vector.broadcast %cst_39 : f32 to vector<8x128xf32>
    %93 = arith.mulf %92, %89 : vector<8x128xf32>
    %94 = arith.select %91, %89, %93 : vector<8x128xi1>, vector<8x128xf32>
    %cst_40 = arith.constant dense<0.000000e+00> : vector<8xf32>
    %95 = vector.multi_reduction <add>, %94, %cst_40 [1] : vector<8x128xf32> to vector<8xf32>
    %96 = vector.shape_cast %95 : vector<8xf32> to vector<8x1xf32>
    %cst_41 = arith.constant 3.125000e-02 : f32
    %97 = vector.broadcast %cst_41 : f32 to vector<8x1xf32>
    %98 = arith.mulf %96, %97 : vector<8x1xf32>
    %99 = arith.mulf %94, %94 : vector<8x128xf32>
    %cst_42 = arith.constant dense<0.000000e+00> : vector<8xf32>
    %100 = vector.multi_reduction <add>, %99, %cst_42 [1] : vector<8x128xf32> to vector<8xf32>
    %101 = vector.shape_cast %100 : vector<8xf32> to vector<8x1xf32>
    %cst_43 = arith.constant 3.125000e-02 : f32
    %102 = vector.broadcast %cst_43 : f32 to vector<8x1xf32>
    %103 = arith.mulf %101, %102 : vector<8x1xf32>
    %104 = arith.mulf %98, %98 : vector<8x1xf32>
    %105 = arith.subf %103, %104 : vector<8x1xf32>
    %cst_44 = arith.constant 0.000000e+00 : f32
    %106 = vector.broadcast %cst_44 : f32 to vector<8x1xf32>
    %107 = arith.maximumf %105, %106 : vector<8x1xf32>
    %108 = vector.broadcast %98 : vector<8x1xf32> to vector<8x128xf32>
    %109 = arith.subf %94, %108 : vector<8x128xf32>
    %cst_45 = arith.constant 9.99999974E-6 : f32
    %110 = vector.broadcast %cst_45 : f32 to vector<8x1xf32>
    %111 = arith.addf %107, %110 : vector<8x1xf32>
    %112 = math.rsqrt %111 : vector<8x1xf32>
    %113 = vector.broadcast %112 : vector<8x1xf32> to vector<8x128xf32>
    %114 = arith.mulf %109, %113 : vector<8x128xf32>
    %115 = vector.broadcast %33 : vector<8x1xf32> to vector<8x128xf32>
    %116 = arith.mulf %114, %115 : vector<8x128xf32>
    %117 = vector.broadcast %34 : vector<8x1xf32> to vector<8x128xf32>
    %118 = arith.addf %116, %117 : vector<8x128xf32>
    %c1_i32_46 = arith.constant 1 : i32
    %119 = tpu.dynamic_rotate %118 by %c1_i32_46 dim 1 : vector<8x128xf32>, i32 -> vector<8x128xf32>
    %120 = vector.broadcast %24 : vector<1x128xf32> to vector<8x128xf32>
    %121 = arith.mulf %119, %120 : vector<8x128xf32>
    %c127_i32_47 = arith.constant 127 : i32
    %122 = tpu.dynamic_rotate %118 by %c127_i32_47 dim 1 : vector<8x128xf32>, i32 -> vector<8x128xf32>
    %123 = vector.broadcast %28 : vector<1x128xf32> to vector<8x128xf32>
    %124 = arith.mulf %122, %123 : vector<8x128xf32>
    %c1_48 = arith.constant 1 : index
    %c0_49 = arith.constant 0 : index
    %c0_50 = arith.constant 0 : index
    %125 = vector.load %arg3[%c1_48, %c0_49, %c0_50] : memref<3x8x8xf32, #tpu.memory_space<vmem>>, vector<1x8x8xf32>
    %126 = vector.shape_cast %125 : vector<1x8x8xf32> to vector<8x8xf32>
    %cst_51 = arith.constant dense<0.000000e+00> : vector<8x128xf32>
    %127 = tpu.matmul %126, %118, %cst_51 {dimension_numbers = #tpu.dot_dimension_numbers<[1], [0], [0], [1], [0, 0, 1, 1], [], []>} : vector<8x8xf32>, vector<8x128xf32>, vector<8x128xf32> -> vector<8x128xf32>
    %c0_52 = arith.constant 0 : index
    %c0_53 = arith.constant 0 : index
    %c0_54 = arith.constant 0 : index
    %128 = vector.load %arg3[%c0_52, %c0_53, %c0_54] : memref<3x8x8xf32, #tpu.memory_space<vmem>>, vector<1x8x8xf32>
    %129 = vector.shape_cast %128 : vector<1x8x8xf32> to vector<8x8xf32>
    %cst_55 = arith.constant dense<0.000000e+00> : vector<8x128xf32>
    %130 = tpu.matmul %129, %121, %cst_55 {dimension_numbers = #tpu.dot_dimension_numbers<[1], [0], [0], [1], [0, 0, 1, 1], [], []>} : vector<8x8xf32>, vector<8x128xf32>, vector<8x128xf32> -> vector<8x128xf32>
    %131 = arith.addf %127, %130 : vector<8x128xf32>
    %c2_56 = arith.constant 2 : index
    %c0_57 = arith.constant 0 : index
    %c0_58 = arith.constant 0 : index
    %132 = vector.load %arg3[%c2_56, %c0_57, %c0_58] : memref<3x8x8xf32, #tpu.memory_space<vmem>>, vector<1x8x8xf32>
    %133 = vector.shape_cast %132 : vector<1x8x8xf32> to vector<8x8xf32>
    %cst_59 = arith.constant dense<0.000000e+00> : vector<8x128xf32>
    %134 = tpu.matmul %133, %124, %cst_59 {dimension_numbers = #tpu.dot_dimension_numbers<[1], [0], [0], [1], [0, 0, 1, 1], [], []>} : vector<8x8xf32>, vector<8x128xf32>, vector<8x128xf32> -> vector<8x128xf32>
    %135 = arith.addf %131, %134 : vector<8x128xf32>
    %136 = vector.broadcast %32 : vector<8x1xf32> to vector<8x128xf32>
    %137 = arith.addf %135, %136 : vector<8x128xf32>
    %138 = vector.broadcast %20 : vector<1x128xf32> to vector<8x128xf32>
    %139 = arith.mulf %137, %138 : vector<8x128xf32>
    %cst_60 = arith.constant 0.000000e+00 : f32
    %140 = vector.broadcast %cst_60 : f32 to vector<8x128xf32>
    %141 = arith.cmpf oge, %139, %140 : vector<8x128xf32>
    %cst_61 = arith.constant 2.000000e-01 : f32
    %142 = vector.broadcast %cst_61 : f32 to vector<8x128xf32>
    %143 = arith.mulf %142, %139 : vector<8x128xf32>
    %144 = arith.select %141, %139, %143 : vector<8x128xi1>, vector<8x128xf32>
    %cst_62 = arith.constant dense<0.000000e+00> : vector<8xf32>
    %145 = vector.multi_reduction <add>, %144, %cst_62 [1] : vector<8x128xf32> to vector<8xf32>
    %146 = vector.shape_cast %145 : vector<8xf32> to vector<8x1xf32>
    %cst_63 = arith.constant 3.125000e-02 : f32
    %147 = vector.broadcast %cst_63 : f32 to vector<8x1xf32>
    %148 = arith.mulf %146, %147 : vector<8x1xf32>
    %149 = arith.mulf %144, %144 : vector<8x128xf32>
    %cst_64 = arith.constant dense<0.000000e+00> : vector<8xf32>
    %150 = vector.multi_reduction <add>, %149, %cst_64 [1] : vector<8x128xf32> to vector<8xf32>
    %151 = vector.shape_cast %150 : vector<8xf32> to vector<8x1xf32>
    %cst_65 = arith.constant 3.125000e-02 : f32
    %152 = vector.broadcast %cst_65 : f32 to vector<8x1xf32>
    %153 = arith.mulf %151, %152 : vector<8x1xf32>
    %154 = arith.mulf %148, %148 : vector<8x1xf32>
    %155 = arith.subf %153, %154 : vector<8x1xf32>
    %cst_66 = arith.constant 0.000000e+00 : f32
    %156 = vector.broadcast %cst_66 : f32 to vector<8x1xf32>
    %157 = arith.maximumf %155, %156 : vector<8x1xf32>
    %158 = vector.broadcast %148 : vector<8x1xf32> to vector<8x128xf32>
    %159 = arith.subf %144, %158 : vector<8x128xf32>
    %cst_67 = arith.constant 9.99999974E-6 : f32
    %160 = vector.broadcast %cst_67 : f32 to vector<8x1xf32>
    %161 = arith.addf %157, %160 : vector<8x1xf32>
    %162 = math.rsqrt %161 : vector<8x1xf32>
    %163 = vector.broadcast %162 : vector<8x1xf32> to vector<8x128xf32>
    %164 = arith.mulf %159, %163 : vector<8x128xf32>
    %165 = vector.broadcast %35 : vector<8x1xf32> to vector<8x128xf32>
    %166 = arith.mulf %164, %165 : vector<8x128xf32>
    %167 = vector.broadcast %36 : vector<8x1xf32> to vector<8x128xf32>
    %168 = arith.addf %166, %167 : vector<8x128xf32>
    %169 = vector.extract_strided_slice %168 {offsets = [0, 0], sizes = [8, 16], strides = [1, 1]} : vector<8x128xf32> to vector<8x16xf32>
    %c0_68 = arith.constant 0 : index
    %c0_69 = arith.constant 0 : index
    %c0_70 = arith.constant 0 : index
    %170 = vector.load %arg5[%c0_68, %c0_69, %c0_70] : memref<2x8x16xf32, #tpu.memory_space<vmem>>, vector<1x8x16xf32>
    %171 = vector.shape_cast %170 : vector<1x8x16xf32> to vector<8x16xf32>
    %172 = vector.shape_cast %169 : vector<8x16xf32> to vector<1x8x16xf32>
    tpu.vector_store %arg5[%c0_68, %c0_69, %c0_70], %172 {strides = array<i32>} : memref<2x8x16xf32, #tpu.memory_space<vmem>>, vector<1x8x16xf32>,
    %173 = vector.extract_strided_slice %168 {offsets = [0, 16], sizes = [8, 16], strides = [1, 1]} : vector<8x128xf32> to vector<8x16xf32>
    %c1_71 = arith.constant 1 : index
    %c0_72 = arith.constant 0 : index
    %c0_73 = arith.constant 0 : index
    %174 = vector.load %arg5[%c1_71, %c0_72, %c0_73] : memref<2x8x16xf32, #tpu.memory_space<vmem>>, vector<1x8x16xf32>
    %175 = vector.shape_cast %174 : vector<1x8x16xf32> to vector<8x16xf32>
    %176 = vector.shape_cast %173 : vector<8x16xf32> to vector<1x8x16xf32>
    tpu.vector_store %arg5[%c1_71, %c0_72, %c0_73], %176 {strides = array<i32>} : memref<2x8x16xf32, #tpu.memory_space<vmem>>, vector<1x8x16xf32>,
    return
  }
}

</mosaic_0001>

<bundles_post_ra>
// kernel: tpu_custom_call.1
= control target key start
LH: loop header
LB: loop body
LE: loop exit
PB: predicated region body
PF: predicated region fallthrough
CT: control target
= control target key end

     0   :  { %10 = vsyncpa [#allocation3], 0  ;;  %s1346_s0 = inlined_call_operand.hbm [shape: f32[2,8,16], index: 0, kind: input, shape index: {}]   ;;  %s1347_s1 = inlined_call_operand.hbm [shape: f32[3,8,8], index: 1, kind: input, shape index: {}]   ;;  %s1348_s2 = inlined_call_operand.hbm [shape: f32[3,8,8], index: 2, kind: input, shape index: {}]   ;;  %s1349_s3 = inlined_call_operand.hbm [shape: f32[3,8,8], index: 3, kind: input, shape index: {}]   ;;  %s1350_s4 = inlined_call_operand.vmem [shape: f32[8,7], index: 4, kind: input, shape index: {}]   ;;  %s1351_s5 = inlined_call_operand.hbm [shape: f32[2,8,16], index: 5, kind: output, shape index: {}]  }
   0x1   :  { %11 = vsyncpa [#allocation6], 0 }
   0x2   :  { %12 = vsyncpa [#allocation9], 0 }
   0x3   :  { %13 = vsyncpa [#allocation4], 0  ;;  %s1132_s18 = smov [#allocation5]   ;;  %s1133_s20 = smov [#allocation2]  }
   0x4   :  { %s31_s19 = sshll.u32 %s1132_s18, 4  ;;  %s19_s21 = sshll.u32 %s1133_s20, 4  ;;  %s32_s19 = int_to_ptr.vmem [resolvable:$true] %s31_s19  ;;  %s1182_s21 = int_to_ptr.vmem [resolvable:$true] %s19_s21 }
   0x5   :  { %s1014_s24 = scalar_lea.hbm %s1347_s1, 384 }
   0x6   :  { %p1015_p0 = scmp.ne.s32.totalorder %s1347_s1, %s1014_s24  ;;  %p1018_p1 = scmp.lt.u32.totalorder %s1014_s24, %s1347_s1 }
   0x8   :  { %p1020_p2 = pnand %p1018_p1, %p1015_p0 }
   0xa   :  { %1023 = shalt.err (!%p1020_p2)
}
   0xb   :  { %s1024_s29 = scalar_lea.vmem %s32_s19, 384  ;;  %p1029_p4 = scmp.lt.s32.totalorder %s32_s19, %s32_s19 }
   0xc   :  { %p1025_p3 = scmp.ne.s32.totalorder %s32_s19, %s1024_s29  ;;  %p1030_p5 = scmp.lt.s32.totalorder %s1024_s29, %s1024_s29 }
   0xe   :  { %p1031_p6 = por %p1030_p5, %p1029_p4 }
  0x10   :  { %p1032_p7 = pnand %p1031_p6, %p1025_p3 }
  0x12   :  { %1035 = shalt.err (!%p1032_p7)
}
  0x13   :  { %s1134_s30 = smov 128   ;;  %s1135_s6 = smov 8  }
  0x14   :  { %37 = dma.hbm_to_vmem [thread:$0]  %s1347_s1, 384, %s32_s19, [#allocation6], %s1134_s30, %s1134_s30, %s1135_s6  }
  0x15   :  { %s1036_s11 = scalar_lea.hbm %s1346_s0, 256 }
  0x16   :  { %p1037_p8 = scmp.ne.s32.totalorder %s1346_s0, %s1036_s11  ;;  %p1040_p9 = scmp.lt.u32.totalorder %s1036_s11, %s1346_s0 }
  0x18   :  { %p1042_p10 = pnand %p1040_p9, %p1037_p8 }
  0x1a   :  { %1045 = shalt.err (!%p1042_p10)
}
  0x1b   :  { %s1046_s16 = scalar_lea.vmem %s1182_s21, 256  ;;  %p1051_p12 = scmp.lt.s32.totalorder %s1182_s21, %s1182_s21 }
  0x1c   :  { %p1047_p11 = scmp.ne.s32.totalorder %s1182_s21, %s1046_s16  ;;  %p1052_p13 = scmp.lt.s32.totalorder %s1046_s16, %s1046_s16 }
  0x1e   :  { %p1053_p0 = por %p1052_p13, %p1051_p12 }
  0x20   :  { %p1054_p1 = pnand %p1053_p0, %p1047_p11 }
  0x22   :  { %1057 = shalt.err (!%p1054_p1)
}
  0x23   :  { %25 = dma.hbm_to_vmem [thread:$0]  %s1346_s0, 256, %s1182_s21, [#allocation3], %s1134_s30, %s1134_s30, %s1135_s6  }
  0x24   :  { %s1136_s18 = smov [#allocation7]   ;;  %s1137_s20 = smov [#allocation8]  }
  0x25   :  { %s43_s19 = sshll.u32 %s1136_s18, 4  ;;  %s55_s22 = sshll.u32 %s1137_s20, 4  ;;  %s44_s19 = int_to_ptr.vmem [resolvable:$true] %s43_s19  ;;  %s1219_s22 = int_to_ptr.vmem [resolvable:$true] %s55_s22 }
  0x26   :  { %s1058_s25 = scalar_lea.hbm %s1348_s2, 384 }
  0x27   :  { %p1059_p2 = scmp.ne.s32.totalorder %s1348_s2, %s1058_s25  ;;  %p1062_p3 = scmp.lt.u32.totalorder %s1058_s25, %s1348_s2 }
  0x29   :  { %p1064_p4 = pnand %p1062_p3, %p1059_p2 }
  0x2b   :  { %1067 = shalt.err (!%p1064_p4)
}
  0x2c   :  { %s1068_s0 = scalar_lea.vmem %s44_s19, 384  ;;  %p1073_p6 = scmp.lt.s32.totalorder %s44_s19, %s44_s19 }
  0x2d   :  { %p1069_p5 = scmp.ne.s32.totalorder %s44_s19, %s1068_s0  ;;  %p1074_p7 = scmp.lt.s32.totalorder %s1068_s0, %s1068_s0 }
  0x2f   :  { %p1075_p8 = por %p1074_p7, %p1073_p6 }
  0x31   :  { %p1076_p9 = pnand %p1075_p8, %p1069_p5 }
  0x33   :  { %1079 = shalt.err (!%p1076_p9)
}
  0x34   :  { %49 = dma.hbm_to_vmem [thread:$0]  %s1348_s2, 384, %s44_s19, [#allocation6], %s1134_s30, %s1134_s30, %s1135_s6  }
  0x35   :  { %s1080_s10 = scalar_lea.hbm %s1349_s3, 384 }
  0x36   :  { %p1081_p10 = scmp.ne.s32.totalorder %s1349_s3, %s1080_s10  ;;  %p1084_p11 = scmp.lt.u32.totalorder %s1080_s10, %s1349_s3 }
  0x38   :  { %p1086_p12 = pnand %p1084_p11, %p1081_p10 }
  0x3a   :  { %1089 = shalt.err (!%p1086_p12)
}
  0x3b   :  { %s1090_s15 = scalar_lea.vmem %s1219_s22, 384  ;;  %p1095_p0 = scmp.lt.s32.totalorder %s1219_s22, %s1219_s22 }
  0x3c   :  { %p1091_p13 = scmp.ne.s32.totalorder %s1219_s22, %s1090_s15  ;;  %p1096_p1 = scmp.lt.s32.totalorder %s1090_s15, %s1090_s15 }
  0x3e   :  { %p1097_p2 = por %p1096_p1, %p1095_p0 }
  0x40   :  { %p1098_p3 = pnand %p1097_p2, %p1091_p13 }
  0x42   :  { %1101 = shalt.err (!%p1098_p3)
}
  0x43   :  { %61 = dma.hbm_to_vmem [thread:$0]  %s1349_s3, 384, %s1219_s22, [#allocation9], %s1134_s30, %s1134_s30, %s1135_s6  }
  0x44   :  { %1124 = dma.done.wait [#allocation3], 256  }
  0x45   :  { %1125 = vsyncadd [#allocation3], 4294967040 }
  0x46   :  { %1126 = dma.done.wait [#allocation6], 768  }
  0x47   :  { %1127 = vsyncadd [#allocation6], 4294966528 }
  0x48   :  { %1128 = dma.done.wait [#allocation9], 384  }
  0x49   :  { %1129 = vsyncadd [#allocation9], 4294966912  ;;  %v1138_v0 = vmov 0.0   ;;  %v102_v1 = vld [vmem:[#allocation2 + $0x8] sm:$0xff]  ;;  %s1139_s1 = smov 16   ;;  %vm1140_vm0 = vmmov 0   ;;  %v76_v9 = vlaneseq }
  0x4a   :  { %943 = vmatprep.subr.mxu1 %v1138_v0  ;;  %938 = vmatprep.subr.mxu0 %v1138_v0  ;;  %v100_v2 = vld [vmem:[#allocation2] sm:$0xff]  ;;  %vm107_vm1 = vcmask 130048   ;;  %v1141_v3 = vmov 0   ;;  %vm109_vm2 = vcmask 261120   ;;  %vm120_vm3 = vcmask 64512   ;;  %v118_v6 = vld [vmem:[#allocation5 + $0x8] sm:$0xff] }
  0x4b   :  { %104 = vrot.lane.b32.xlu0 %v102_v1, %s1139_s1  ;;  %940 = vmatprep.mubr.msk.f32.mxu0 %vm1140_vm0, %v1138_v0  ;;  %s1142_s3 = smov 127   ;;  %s1143_s17 = smov 1   ;;  %v1269_v8 = vld [vmem:[%s1350_s4] sm:$0xff]  ;;  %v77_v10 = vand.u32 127, %v76_v9  ;;  %v119_v17 = vld [vmem:[#allocation5] sm:$0xff]  ;;  %v1144_v32 = vmov 1  }
  0x4c   :  { %945 = vmatprep.mubr.msk.f32.mxu1 %vm1140_vm0, %v1138_v0  ;;  %1003 = vset.pattern.permute.xlu1 %v1141_v3  ;;  %v268_v19 = vld [vmem:[#allocation5 + $0x10] sm:$0xff]  ;;  %v360_v35 = vld [vmem:[#allocation7 + $0x8] sm:$0xff]  ;;  %v361_v39 = vld [vmem:[#allocation7] sm:$0xff]  ;;  %v1145_v44 = vmov 3   ;;  %v1146_v45 = vmov 4   ;;  %v1147_v9 = vmov 2  }
  0x4d   :  { %v82_v11 = vand.u32 15, %v77_v10  ;;  %vm90_vm6 = vcmp.lt.s32.totalorder %v77_v10, 32  ;;  %1004 = vset.pattern.permute.xlu0 %v1144_v32  ;;  %v509_v41 = vld [vmem:[#allocation7 + $0x10] sm:$0xff]  ;;  %s1150_s4 = smov 112   ;;  %s1151_s20 = smov [#allocation10]  }
  0x4e   :  { %v1292_v29 = vsel %vm90_vm6, 1.0, %v1138_v0  ;;  %s893_s22 = sshll.u32 %s1151_s20, 4  ;;  %s894_s22 = int_to_ptr.vmem [resolvable:$true] %s893_s22 }
  0x4f   :  { %vm93_vm4 = vcmp.ne.s32.totalorder %v82_v11, 0  ;;  %vm96_vm5 = vcmp.ne.s32.totalorder %v82_v11, 15  ;;  %s1102_s23 = scalar_lea.vmem %s894_s22, 256  ;;  %p1107_p5 = scmp.lt.s32.totalorder %s894_s22, %s894_s22 }
  0x50   :  { %v1276_v12 = vsel %vm93_vm4, 1.0, %v1138_v0  ;;  %v1279_v13 = vsel %vm96_vm5, 1.0, %v1138_v0  ;;  %p1103_p4 = scmp.ne.s32.totalorder %s894_s22, %s1102_s23  ;;  %p1108_p6 = scmp.lt.s32.totalorder %s1102_s23, %s1102_s23 }
  0x52   :  { %p1109_p7 = por %p1108_p6, %p1107_p5 }
  0x54   :  { %p1110_p8 = pnand %p1109_p7, %p1103_p4 }
  0xbd   :  { %v105_v4 = vpop.permute.xlu0 %104 }
  0xbe   :  { %v108_v5 = vsel %vm107_vm1, %v100_v2, %v105_v4 }
  0xbf   :  { %944 = vmatpush3.msk.msra.mxu1 %vm109_vm2, %v108_v5  ;;  %v110_v7 = vsel %vm109_vm2, %v108_v5, 0.0 }
  0xc0   :  { %114 = vrot.lane.b32.xlu1 %v110_v7, %s1142_s3  ;;  %111 = vrot.lane.b32.xlu0 %v110_v7, %s1143_s17 }
  0xc1   :  { %946 = vmatmul.mubr.msk.f32.vlgmr.msra.gmra.mrb[0].mxu1 %vm120_vm3, %v118_v6  ;;  %953 = vmatprep.subr.mxu1 %v1138_v0 }
  0xc2   :  { %955 = vmatprep.mubr.msk.f32.mxu1 %vm1140_vm0, %v1138_v0 }
  0xc4   :  { %345 = vperm.xlu1 %1003, %v1269_v8  }
  0xc8   :  { %1005 = vset.pattern.permute.xlu1 %v1145_v44 }
 0x132   :  { %v115_v14 = vpop.permute.xlu1 %114  ;;  %v112_v15 = vpop.permute.xlu0 %111 }
 0x133   :  { %v113_v16 = vmul.f32 %v1276_v12, %v112_v15  ;;  %v116_v18 = vmul.f32 %v1279_v13, %v115_v14  ;;  %v624_v14 = vld [vmem:[#allocation8 + $0x8] sm:$0xff] }
 0x135   :  { %939 = vmatpush3.msra.mxu0 %v113_v16 }
 0x136   :  { %941 = vmatmul.mubr.msk.f32.vlgmr.msra.gmra.mrb[0].mxu0 %vm120_vm3, %v119_v17  ;;  %948 = vmatprep.subr.mxu0 %v1138_v0  ;;  %v625_v17 = vld [vmem:[#allocation8] sm:$0xff] }
 0x137   :  { %949 = vmatpush3.msra.mxu0 %v116_v18  ;;  %950 = vmatprep.mubr.msk.f32.mxu0 %vm1140_vm0, %v1138_v0 }
 0x138   :  { %958 = vmatprep.subr.mxu0 %v1138_v0 }
 0x13a   :  { %951 = vmatmul.mubr.msk.f32.vlgmr.msra.gmra.mrb[2].mxu0 %vm120_vm3, %v268_v19 }
 0x13b   :  { %960 = vmatprep.mubr.msk.f32.mxu0 %vm1140_vm0, %v1138_v0 }
 0x143   :  { %v346_v26 = vpop.permute.xlu1 %345 }
 0x194   :  { %v263_v20 = vpop.f32.mrb[0].mxu1 }
 0x195   :  { %v947_v21 = vpop.f32.mrb[1].mxu1 }
 0x209   :  { %v190_v22 = vpop.f32.mrb[0].mxu0 }
 0x20a   :  { %v264_v23 = vadd.f32 %v263_v20, %v190_v22  ;;  %v942_v24 = vpop.f32.mrb[1].mxu0  ;;  %v773_v20 = vld [vmem:[#allocation8 + $0x10] sm:$0xff] }
 0x20d   :  { %v338_v25 = vpop.f32.mrb[2].mxu0 }
 0x20e   :  { %v342_v27 = vadd.f32 %v338_v25, %v264_v23  ;;  %v952_v28 = vpop.f32.mrb[3].mxu0  ;;  %v1148_v23 = vmov 5  }
 0x210   :  { %v348_v30 = vadd.f32 %v346_v26, %v342_v27 }
 0x212   :  { %v349_v31 = vmul.f32 %v1292_v29, %v348_v30 }
 0x214   :  { %vm350_vm7 = vcmp.ge.f32.partialorder %v349_v31, 0.0  ;;  %v351_v33 = vmul.f32 0.2, %v349_v31 }
 0x216   :  { %v352_v34 = vsel %vm350_vm7, %v349_v31, %v351_v33 }
 0x217   :  { %356 = vrot.lane.b32.xlu1 %v352_v34, %s1142_s3  ;;  %353 = vrot.lane.b32.xlu0 %v352_v34, %s1143_s17 }
 0x218   :  { %959 = vmatpush3.msra.mxu0 %v352_v34 }
 0x219   :  { %961 = vmatmul.mubr.msk.f32.vlgmr.msra.gmra.mrb[4].mxu0 %vm120_vm3, %v360_v35  ;;  %968 = vmatprep.subr.mxu0 %v1138_v0 }
 0x21a   :  { %970 = vmatprep.mubr.msk.f32.mxu0 %vm1140_vm0, %v1138_v0 }
 0x21b   :  { %585 = vperm.xlu0 %1004, %v1269_v8  }
 0x21f   :  { %1006 = vset.pattern.permute.xlu0 %v1146_v45 }
 0x289   :  { %v357_v36 = vpop.permute.xlu1 %356  ;;  %v354_v37 = vpop.permute.xlu0 %353 }
 0x28a   :  { %v355_v38 = vmul.f32 %v1276_v12, %v354_v37  ;;  %v358_v40 = vmul.f32 %v1279_v13, %v357_v36 }
 0x28c   :  { %954 = vmatpush3.msra.mxu1 %v355_v38 }
 0x28d   :  { %956 = vmatmul.mubr.msk.f32.vlgmr.msra.gmra.mrb[2].mxu1 %vm120_vm3, %v361_v39  ;;  %963 = vmatprep.subr.mxu1 %v1138_v0 }
 0x28e   :  { %964 = vmatpush3.msra.mxu1 %v358_v40  ;;  %965 = vmatprep.mubr.msk.f32.mxu1 %vm1140_vm0, %v1138_v0 }
 0x28f   :  { %973 = vmatprep.subr.mxu1 %v1138_v0 }
 0x291   :  { %966 = vmatmul.mubr.msk.f32.vlgmr.msra.gmra.mrb[4].mxu1 %vm120_vm3, %v509_v41 }
 0x292   :  { %975 = vmatprep.mubr.msk.f32.mxu1 %vm1140_vm0, %v1138_v0 }
 0x29a   :  { %v586_v50 = vpop.permute.xlu0 %585 }
 0x2ec   :  { %v504_v42 = vpop.f32.mrb[4].mxu0 }
 0x2ed   :  { %v962_v43 = vpop.f32.mrb[5].mxu0 }
 0x360   :  { %v431_v46 = vpop.f32.mrb[2].mxu1 }
 0x361   :  { %v505_v47 = vadd.f32 %v504_v42, %v431_v46  ;;  %v957_v48 = vpop.f32.mrb[3].mxu1 }
 0x364   :  { %v579_v49 = vpop.f32.mrb[4].mxu1 }
 0x365   :  { %v583_v51 = vadd.f32 %v579_v49, %v505_v47  ;;  %v967_v52 = vpop.f32.mrb[5].mxu1 }
 0x367   :  { %v588_v53 = vadd.f32 %v586_v50, %v583_v51 }
 0x369   :  { %v589_v54 = vmul.f32 %v1292_v29, %v588_v53 }
 0x36b   :  { %vm590_vm8 = vcmp.ge.f32.partialorder %v589_v54, 0.0  ;;  %v591_v55 = vmul.f32 0.2, %v589_v54 }
 0x36d   :  { %v592_v56 = vsel %vm590_vm8, %v589_v54, %v591_v55 }
 0x36e   :  { %593 = vadd.xlane.f32.xlu1 %v592_v56  ;;  %v596_v57 = vmul.f32 %v592_v56, %v592_v56 }
 0x370   :  { %597 = vadd.xlane.f32.xlu0 %v596_v57 }
 0x37f   :  { %608 = vperm.xlu1 %1005, %v1269_v8  }
 0x383   :  { %1007 = vset.pattern.permute.xlu1 %v1147_v9 }
 0x386   :  { %613 = vperm.xlu0 %1006, %v1269_v8  }
 0x3fb   :  { %v594_v58 = vpop.xlane.xlu1 %593 }
 0x3fc   :  { %v595_v59 = vmul.f32 0.03125, %v594_v58 }
 0x3fd   :  { %v598_v60 = vpop.xlane.xlu0 %597 }
 0x3fe   :  { %v600_v61 = vmul.f32 %v595_v59, %v595_v59  ;;  %v599_v62 = vmul.f32 0.03125, %v598_v60  ;;  %v603_v3 = vsub.f32 %v592_v56, %v595_v59 }
 0x3ff   :  { %v609_v5 = vpop.permute.xlu1 %608 }
 0x400   :  { %v601_v63 = vsub.f32 %v599_v62, %v600_v61 }
 0x402   :  { %v602_v1 = vmax.f32 %v601_v63, 0.0 }
 0x404   :  { %v604_v2 = vadd.f32 1e-05, %v602_v1 }
 0x405   :  { %v614_v7 = vpop.permute.xlu0 %613 }
 0x406   :  { %1010 = vrsqrt.f32 %v604_v2 }
 0x410   :  { %v1011_v4 = vpop.eup %1010 }
 0x411   :  { %v606_v6 = vmul.f32 %v1011_v4, %v603_v3 }
 0x413   :  { %v611_v10 = vmul.f32 %v609_v5, %v606_v6 }
 0x415   :  { %v616_v11 = vadd.f32 %v614_v7, %v611_v10 }
 0x417   :  { %617 = vrot.lane.b32.xlu1 %v616_v11, %s1143_s17  ;;  %974 = vmatpush3.msra.mxu1 %v616_v11 }
 0x418   :  { %976 = vmatmul.mubr.msk.f32.vlgmr.msra.gmra.mrb[6].mxu1 %vm120_vm3, %v624_v14 }
 0x41b   :  { %620 = vrot.lane.b32.xlu1 %v616_v11, %s1142_s3 }
 0x41f   :  { %849 = vperm.xlu1 %1007, %v1269_v8  }
 0x423   :  { %1008 = vset.pattern.permute.xlu1 %v1148_v23 }
 0x489   :  { %v618_v15 = vpop.permute.xlu1 %617 }
 0x48a   :  { %v619_v16 = vmul.f32 %v1276_v12, %v618_v15  ;;  %v1149_v12 = vmov 6  }
 0x48b   :  { %1009 = vset.pattern.permute.xlu0 %v1149_v12 }
 0x48c   :  { %969 = vmatpush3.msra.mxu0 %v619_v16 }
 0x48d   :  { %971 = vmatmul.mubr.msk.f32.vlgmr.msra.gmra.mrb[6].mxu0 %vm120_vm3, %v625_v17  ;;  %v621_v18 = vpop.permute.xlu1 %620  ;;  %978 = vmatprep.subr.mxu0 %v1138_v0 }
 0x48e   :  { %v622_v19 = vmul.f32 %v1279_v13, %v621_v18  ;;  %980 = vmatprep.mubr.msk.f32.mxu0 %vm1140_vm0, %v1138_v0 }
 0x490   :  { %979 = vmatpush3.msra.mxu0 %v622_v19 }
 0x491   :  { %981 = vmatmul.mubr.msk.f32.vlgmr.msra.gmra.mrb[8].mxu0 %vm120_vm3, %v773_v20 }
 0x49e   :  { %v850_v28 = vpop.permute.xlu1 %849 }
 0x4eb   :  { %v768_v21 = vpop.f32.mrb[6].mxu1 }
 0x4ec   :  { %v977_v22 = vpop.f32.mrb[7].mxu1 }
 0x560   :  { %v695_v24 = vpop.f32.mrb[6].mxu0 }
 0x561   :  { %v769_v25 = vadd.f32 %v768_v21, %v695_v24  ;;  %v972_v26 = vpop.f32.mrb[7].mxu0 }
 0x564   :  { %v843_v27 = vpop.f32.mrb[8].mxu0 }
 0x565   :  { %v847_v30 = vadd.f32 %v843_v27, %v769_v25  ;;  %v982_v13 = vpop.f32.mrb[9].mxu0 }
 0x567   :  { %v852_v31 = vadd.f32 %v850_v28, %v847_v30 }
 0x569   :  { %v853_v0 = vmul.f32 %v1292_v29, %v852_v31 }
 0x56b   :  { %vm854_vm9 = vcmp.ge.f32.partialorder %v853_v0, 0.0  ;;  %v855_v32 = vmul.f32 0.2, %v853_v0 }
 0x56d   :  { %v856_v33 = vsel %vm854_vm9, %v853_v0, %v855_v32 }
 0x56e   :  { %857 = vadd.xlane.f32.xlu1 %v856_v33  ;;  %v860_v34 = vmul.f32 %v856_v33, %v856_v33 }
 0x570   :  { %861 = vadd.xlane.f32.xlu0 %v860_v34 }
 0x57f   :  { %872 = vperm.xlu1 %1008, %v1269_v8  }
 0x586   :  { %877 = vperm.xlu0 %1009, %v1269_v8  }
 0x5fb   :  { %v858_v35 = vpop.xlane.xlu1 %857 }
 0x5fc   :  { %v859_v36 = vmul.f32 0.03125, %v858_v35 }
 0x5fd   :  { %v862_v37 = vpop.xlane.xlu0 %861 }
 0x5fe   :  { %v864_v38 = vmul.f32 %v859_v36, %v859_v36  ;;  %v863_v39 = vmul.f32 0.03125, %v862_v37  ;;  %v867_v29 = vsub.f32 %v856_v33, %v859_v36 }
 0x5ff   :  { %v873_v44 = vpop.permute.xlu1 %872 }
 0x600   :  { %v865_v40 = vsub.f32 %v863_v39, %v864_v38 }
 0x602   :  { %v866_v41 = vmax.f32 %v865_v40, 0.0 }
 0x604   :  { %v868_v42 = vadd.f32 1e-05, %v866_v41 }
 0x605   :  { %v878_v46 = vpop.permute.xlu0 %877 }
 0x606   :  { %1012 = vrsqrt.f32 %v868_v42 }
 0x610   :  { %v1013_v43 = vpop.eup %1012 }
 0x611   :  { %v870_v45 = vmul.f32 %v1013_v43, %v867_v29 }
 0x613   :  { %v875_v47 = vmul.f32 %v873_v44, %v870_v45 }
 0x615   :  { %v880_v48 = vadd.f32 %v878_v46, %v875_v47 }
 0x617   :  { %881 = vst.msk [vmem:[#allocation10] sm:$0xff] %vm107_vm1, %v880_v48  ;;  %883 = vrot.lane.b32.xlu1 %v880_v48, %s1150_s4 }
 0x689   :  { %v884_v8 = vpop.permute.xlu1 %883 }
 0x68a   :  { %887 = vst.msk [vmem:[#allocation10 + $0x8] sm:$0xff] %vm107_vm1, %v884_v8 }
 0x68b   :  { %1113 = shalt.err (!%p1110_p8)
}
 0x68c   :  { %s1114_s26 = scalar_lea.hbm %s1351_s5, 256 }
 0x68d   :  { %p1115_p9 = scmp.ne.s32.totalorder %s1351_s5, %s1114_s26  ;;  %p1118_p10 = scmp.lt.u32.totalorder %s1114_s26, %s1351_s5 }
 0x68f   :  { %p1120_p11 = pnand %p1118_p10, %p1115_p9 }
 0x691   :  { %1123 = shalt.err (!%p1120_p11)
}
 0x692   :  { %899 = dma.vmem_to_hbm [thread:$0]  %s894_s22, 256, %s1351_s5, [#allocation4], %s1134_s30, %s1134_s30, %s1135_s6  }
 0x693   :  { %1130 = dma.done.wait [#allocation4], 256  }
 0x694   :  { %1131 = vsyncadd [#allocation4], 4294967040 }
 0x695   :  { %903 = vsyncpa [#allocation3], 1 }
 0x696   :  { %904 = vsyncpa [#allocation6], 1 }
 0x697   :  { %905 = vsyncpa [#allocation9], 1 }
 0x698   :  { %906 = vsyncpa [#allocation4], 1 }

</bundles_post_ra>
